<compile_context>
chip_gen: v7x
topology: tpu7x:2x2x1
jax: 0.10.0
libtpu: 0.0.40
codegen_flags: <defaults>
</compile_context>

<pallas_src>
import functools
import math

import jax
import jax.numpy as jnp
from jax.experimental import pallas as pl
from jax.experimental.pallas import tpu as pltpu

EPS = 1e-5
BOUND = 10.0

_MAX_FEATURE_TILE = 8192
_MAX_RELAYOUT_COLS = 16384
_SMALL_INPUT_BYTES = 1 << 20          # below this, plain jnp (no pallas_call)
_MAX_BLOCK_BYTES = 16 << 20           # diminishing returns past ~16 MiB blocks
_FALLBACK_VMEM_CAP = 64 * 1024 * 1024 # safe on every generation (v7x physical)


def _cdiv(a, b):
    return -(-a // b)


def _norm_kernel(x_ref, p_ref, o_ref, *, clip, bound):
    x = x_ref[...]                       # (tb, tf)
    p = p_ref[...]                       # (2, tf): row 0 = scale, row 1 = offset
    y = x * p[0:1, :] + p[1:2, :]        # broadcast over sublanes
    if clip:
        y = jnp.clip(y, -bound, bound)
    o_ref[...] = y.astype(o_ref.dtype)


def _vmem_plan():
    """Per-generation (vmem_limit_bytes, per-block byte budget)."""
    try:
        cap = int(pltpu.get_tpu_info().vmem_capacity_bytes)
    except Exception:  # no device / API unavailable -> conservative fallback
        cap = _FALLBACK_VMEM_CAP
    limit = min(int(cap * 0.75), cap - (16 << 20))
    limit = max(limit, 16 << 20)
    # in + out double-buffered ~= 4x block, small headroom for the params stream.
    block_bytes = max(1 << 20, min((limit - (2 << 20)) // 4, _MAX_BLOCK_BYTES))
    return limit, block_bytes


def _choose_tiles(rows, cols, itemsize, block_bytes):
    """Pick (row_tile, feature_tile) from the VMEM block budget."""
    align = max(8, 32 // itemsize)       # 8 for f32, 16 for bf16, 32 for int8
    # Feature tile: full extent unless very large and cleanly 128-tileable.
    if cols > _MAX_FEATURE_TILE and cols % 128 == 0:
        tf = _MAX_FEATURE_TILE
        while cols % tf:
            tf //= 2                      # stays a multiple of 128 (stops at 128)
    else:
        tf = cols
    # Row tile: as big as the block budget allows, sublane aligned; no row cap.
    row_budget = block_bytes // max(1, tf * itemsize)
    row_budget = max(align, (row_budget // align) * align)
    if row_budget >= rows:
        tb = rows
        # Megacore: if the whole grid would be one block, split rows so both
        # v7x TensorCores get work (harmless elsewhere).
        if _cdiv(cols, tf) == 1 and rows >= 2 * align:
            tb = _cdiv(_cdiv(rows, 2), align) * align
    else:
        tb = row_budget
    return tb, tf


def online_mean_std_forward(data, mean, std, *, eps=EPS, subtract_mean=True,
                            clip=False, bound=BOUND, use_kernel=None):
    """Pallas implementation of OnlineMeanStd.forward.

    data: (..., D), mean: (D,), std: (D,).  use_kernel=None -> auto (fast
    jnp path for tiny inputs), True/False forces the choice.
    """
    orig_shape = data.shape
    D = orig_shape[-1] if data.ndim >= 1 else 1
    data2d = data.reshape(1, -1) if data.ndim <= 1 else data.reshape(-1, D)
    B, D = data2d.shape

    mean_f = jnp.asarray(mean, jnp.float32).reshape(-1)
    std_f = jnp.asarray(std, jnp.float32).reshape(-1)
    assert mean_f.shape == (D,) and std_f.shape == (D,)

    # Hoisted, grid-invariant normalization parameters.
    scale = 1.0 / (std_f + eps)
    offset = (-mean_f * scale) if subtract_mean else jnp.zeros_like(scale)

    itemsize = jnp.dtype(data.dtype).itemsize
    if use_kernel is None:
        use_kernel = (B * D * itemsize) >= _SMALL_INPUT_BYTES
    if not use_kernel:
        # Tiny input: a standalone pallas_call is a fusion barrier + fixed
        # launch overhead; let XLA fuse the normalize instead.
        y = data2d.astype(jnp.float32) * scale[None, :] + offset[None, :]
        if clip:
            y = jnp.clip(y, -bound, bound)
        return y.astype(data.dtype).reshape(orig_shape)

    # Lane-dense relayout: (B, D) -> (B*D/L, L) with L = lcm(D, 128) whenever
    # D is not already a multiple of 128 and the element count divides L.
    new_cols = math.lcm(D, 128)
    if (D % 128 != 0 and new_cols <= _MAX_RELAYOUT_COLS
            and (B * D) % new_cols == 0):
        rep = new_cols // D
        rows, cols = (B * D) // new_cols, new_cols
        x2 = data2d.reshape(rows, cols)
        scale2 = jnp.tile(scale, rep)
        offset2 = jnp.tile(offset, rep)
    else:
        rows, cols = B, D
        x2 = data2d
        scale2, offset2 = scale, offset
    params = jnp.stack([scale2, offset2], axis=0)        # (2, cols)

    vmem_limit, block_bytes = _vmem_plan()
    tb, tf = _choose_tiles(rows, cols, itemsize, block_bytes)
    grid = (pl.cdiv(rows, tb), pl.cdiv(cols, tf))

    kernel = functools.partial(_norm_kernel, clip=clip, bound=bound)

    out = pl.pallas_call(
        kernel,
        out_shape=jax.ShapeDtypeStruct((rows, cols), data.dtype),
        grid_spec=pltpu.PrefetchScalarGridSpec(
            num_scalar_prefetch=0,
            grid=grid,
            in_specs=[
                pl.BlockSpec((tb, tf), lambda i, j: (i, j)),
                pl.BlockSpec((2, tf), lambda i, j: (0, j)),
            ],
            out_specs=pl.BlockSpec((tb, tf), lambda i, j: (i, j)),
        ),
        compiler_params=pltpu.CompilerParams(
            dimension_semantics=("parallel", "parallel"),
            vmem_limit_bytes=vmem_limit,
        ),
        cost_estimate=pl.CostEstimate(
            flops=3 * rows * cols,
            transcendentals=0,
            bytes_accessed=rows * cols * 2 * itemsize + 2 * cols * 4,
        ),
    )(x2, params)

    return out.reshape(orig_shape)


def _reference(data, mean, std, *, eps=EPS, subtract_mean=True, clip=False,
               bound=BOUND):
    if subtract_mean:
        y = (data - mean[None, :]) / (std[None, :] + eps)
    else:
        y = data / (std[None, :] + eps)
    if clip:
        y = jnp.clip(y, -bound, bound)
    return y


if __name__ == "__main__":
    key = jax.random.PRNGKey(0)
    k1, k2, k3, k4, k5 = jax.random.split(key, 5)

    # Primary (module-sized) example: batch=8, obs_dim=32.  Force the Pallas
    # kernel path so the kernel itself is exercised at a small shape.
    B, D = 8, 32
    data = jax.random.normal(k1, (B, D), dtype=jnp.float32) * 3.0
    mean = jax.random.normal(k2, (D,), dtype=jnp.float32) * 0.1
    std = jnp.abs(jax.random.normal(k3, (D,), dtype=jnp.float32)) + 0.5

    out = online_mean_std_forward(data, mean, std, subtract_mean=True,
                                  clip=True, use_kernel=True)
    out = jax.block_until_ready(out)
    ref = _reference(data, mean, std, subtract_mean=True, clip=True)
    assert out.shape == (B, D) and out.dtype == jnp.float32
    assert jnp.allclose(out, ref, atol=1e-4, rtol=1e-5)

    # Other forward branch (no mean subtraction, no clipping), kernel forced.
    out2 = online_mean_std_forward(data, mean, std, subtract_mean=False,
                                   clip=False, use_kernel=True)
    out2 = jax.block_until_ready(out2)
    ref2 = _reference(data, mean, std, subtract_mean=False, clip=False)
    assert jnp.allclose(out2, ref2, atol=1e-4, rtol=1e-5)

    # Auto path for a tiny input -> plain jnp fast path (no pallas_call).
    out_fast = online_mean_std_forward(data, mean, std, subtract_mean=True,
                                       clip=True)
    out_fast = jax.block_until_ready(out_fast)
    assert jnp.allclose(out_fast, ref, atol=1e-4, rtol=1e-5)

    # Non-divisor feature width (D=96): exercises the lcm(D,128)=384 lane-dense
    # relayout (2048*96 elements reshape to (512, 384)).
    B3, D3 = 2048, 96
    data3 = jax.random.normal(k4, (B3, D3), dtype=jnp.float32) * 2.0
    mean3 = jax.random.normal(k5, (D3,), dtype=jnp.float32) * 0.2
    std3 = jnp.abs(jax.random.normal(k2, (D3,), dtype=jnp.float32)) + 0.3
    out3 = online_mean_std_forward(data3, mean3, std3, subtract_mean=True,
                                   clip=True, use_kernel=True)
    out3 = jax.block_until_ready(out3)
    ref3 = _reference(data3, mean3, std3, subtract_mean=True, clip=True)
    assert jnp.allclose(out3, ref3, atol=1e-4, rtol=1e-5)

    # Larger batch with odd row count: multi-block row grid (megacore split)
    # and a partial tail block.
    B4, D4 = 4103, 256
    data4 = jax.random.normal(k4, (B4, D4), dtype=jnp.float32)
    mean4 = jnp.full((D4,), 0.25, jnp.float32)
    std4 = jnp.full((D4,), 1.5, jnp.float32)
    out4 = online_mean_std_forward(data4, mean4, std4, subtract_mean=True,
                                   clip=True, use_kernel=True)
    out4 = jax.block_until_ready(out4)
    ref4 = _reference(data4, mean4, std4, subtract_mean=True, clip=True)
    assert jnp.allclose(out4, ref4, atol=1e-4, rtol=1e-5)

    print("KERNEL_OK")
</pallas_src>

<mosaic_0001>
module attributes {stable_mosaic.version = 11 : i64} {
  func.func @_norm_kernel(%arg0: i32, %arg1: i32, %arg2: memref<2x128xf32, #tpu.memory_space<vmem>>, %arg3: memref<2x128xf32, #tpu.memory_space<vmem>>, %arg4: memref<2x128xf32, #tpu.memory_space<vmem>>) attributes {dimension_semantics = [#tpu.dimension_semantics<parallel>, #tpu.dimension_semantics<parallel>], iteration_bounds = array<i64: 1, 1>, scalar_prefetch = 0 : i64, scratch_operands = 0 : i64, tpu.core_type = #tpu.core_type<tc>, window_params = [{transform_indices = @transform_0, window_bounds = array<i64: 2, 128>}, {transform_indices = @transform_1, window_bounds = array<i64: 2, 128>}, {transform_indices = @transform_2, window_bounds = array<i64: 2, 128>}]} {
    %c0 = arith.constant 0 : index
    %c0_0 = arith.constant 0 : index
    %0 = vector.load %arg2[%c0, %c0_0] : memref<2x128xf32, #tpu.memory_space<vmem>>, vector<2x128xf32>
    %c0_1 = arith.constant 0 : index
    %c0_2 = arith.constant 0 : index
    %1 = vector.load %arg3[%c0_1, %c0_2] : memref<2x128xf32, #tpu.memory_space<vmem>>, vector<2x128xf32>
    %2 = vector.extract_strided_slice %1 {offsets = [0, 0], sizes = [1, 128], strides = [1, 1]} : vector<2x128xf32> to vector<1x128xf32>
    %3 = vector.broadcast %2 : vector<1x128xf32> to vector<2x128xf32>
    %4 = arith.mulf %0, %3 : vector<2x128xf32>
    %5 = vector.extract_strided_slice %1 {offsets = [1, 0], sizes = [1, 128], strides = [1, 1]} : vector<2x128xf32> to vector<1x128xf32>
    %6 = vector.broadcast %5 : vector<1x128xf32> to vector<2x128xf32>
    %7 = arith.addf %4, %6 : vector<2x128xf32>
    %cst = arith.constant -1.000000e+01 : f32
    %cst_3 = arith.constant 1.000000e+01 : f32
    %8 = vector.broadcast %cst : f32 to vector<2x128xf32>
    %9 = arith.maximumf %8, %7 : vector<2x128xf32>
    %10 = vector.broadcast %cst_3 : f32 to vector<2x128xf32>
    %11 = arith.minimumf %10, %9 : vector<2x128xf32>
    %c0_4 = arith.constant 0 : index
    %c0_5 = arith.constant 0 : index
    %12 = vector.load %arg4[%c0_4, %c0_5] : memref<2x128xf32, #tpu.memory_space<vmem>>, vector<2x128xf32>
    tpu.vector_store %arg4[%c0_4, %c0_5], %11 {strides = array<i32>} : memref<2x128xf32, #tpu.memory_space<vmem>>, vector<2x128xf32>,
    return
  }
  func.func @transform_0(%arg0: i32, %arg1: i32) -> (i32, i32) {
    %c0_i32 = arith.constant 0 : i32
    return %arg0, %arg1 : i32, i32
  }
  func.func @transform_1(%arg0: i32, %arg1: i32) -> (i32, i32) {
    %c0_i32 = arith.constant 0 : i32
    %c0_i32_0 = arith.constant 0 : i32
    return %c0_i32, %arg1 : i32, i32
  }
  func.func @transform_2(%arg0: i32, %arg1: i32) -> (i32, i32) {
    %c0_i32 = arith.constant 0 : i32
    return %arg0, %arg1 : i32, i32
  }
}

</mosaic_0001>

<bundles_post_ra>
// kernel: tpu_custom_call.1
= control target key start
LH: loop header
LB: loop body
LE: loop exit
PB: predicated region body
PF: predicated region fallthrough
CT: control target
= control target key end

     0   :  { %7 = vsyncpa [#allocation3], 0  ;;  %s149_s0 = inlined_call_operand.hbm [shape: f32[2,128], index: 0, kind: input, shape index: {}]   ;;  %s150_s1 = inlined_call_operand.vmem [shape: f32[2,128], index: 1, kind: input, shape index: {}]   ;;  %s151_s2 = inlined_call_operand.hbm [shape: f32[2,128], index: 2, kind: output, shape index: {}]  }
   0x1   :  { %8 = vsyncpa [#allocation4], 0  ;;  %s105_s9 = smov [#allocation2]   ;;  %s57_s13 = scalar_lea.hbm %s149_s0, 32 }
   0x2   :  { %s15_s10 = sshll.u32 %s105_s9, 4  ;;  %p58_p0 = scmp.ne.s32.totalorder %s149_s0, %s57_s13  ;;  %s16_s10 = int_to_ptr.vmem [resolvable:$true] %s15_s10 }
   0x3   :  { %p61_p1 = scmp.lt.u32.totalorder %s57_s13, %s149_s0 }
   0x5   :  { %p63_p2 = pnand %p61_p1, %p58_p0 }
   0x7   :  { %66 = shalt.err (!%p63_p2)
}
   0x8   :  { %s67_s18 = scalar_lea.vmem %s16_s10, 32  ;;  %p72_p4 = scmp.lt.s32.totalorder %s16_s10, %s16_s10 }
   0x9   :  { %p68_p3 = scmp.ne.s32.totalorder %s16_s10, %s67_s18  ;;  %p73_p5 = scmp.lt.s32.totalorder %s67_s18, %s67_s18 }
   0xb   :  { %p74_p6 = por %p73_p5, %p72_p4 }
   0xd   :  { %p75_p7 = pnand %p74_p6, %p68_p3 }
   0xf   :  { %78 = shalt.err (!%p75_p7)
}
  0x10   :  { %18 = dma.hbm_to_vmem [thread:$0]  %s149_s0, 32, %s16_s10, [#allocation3]  }
  0x11   :  { %101 = dma.done.wait [#allocation3], 32  }
  0x12   :  { %102 = vsyncadd [#allocation3], 4294967264  ;;  %v26_v0 = vlaneseq  ;;  %v24_v4 = vld [vmem:[#allocation2] sm:$0x3]  ;;  %s106_s23 = smov [#allocation5]  }
  0x13   :  { %v25_v5 = vld [vmem:[%s150_s1] sm:$0x3]  ;;  %s45_s24 = sshll.u32 %s106_s23, 4  ;;  %s46_s24 = int_to_ptr.vmem [resolvable:$true] %s45_s24 }
  0x14   :  { %v27_v1 = vshrl.u32 %v26_v0, 7  ;;  %s79_s0 = scalar_lea.vmem %s46_s24, 32  ;;  %p84_p9 = scmp.lt.s32.totalorder %s46_s24, %s46_s24 }
  0x15   :  { %p80_p8 = scmp.ne.s32.totalorder %s46_s24, %s79_s0  ;;  %p85_p10 = scmp.lt.s32.totalorder %s79_s0, %s79_s0 }
  0x16   :  { %v28_v2 = vsub.s32 0, %v27_v1  ;;  %v33_v3 = vsub.s32 1, %v27_v1 }
  0x17   :  { %p86_p11 = por %p85_p10, %p84_p9 }
  0x18   :  { %v29_v6 = vrot.slane %v25_v5, %v28_v2  ;;  %v34_v7 = vrot.slane %v25_v5, %v33_v3 }
  0x19   :  { %p87_p12 = pnand %p86_p11, %p80_p8 }
  0x1a   :  { %v30_v8 = vmul.f32 %v29_v6, %v24_v4 }
  0x1c   :  { %v35_v9 = vadd.f32 %v34_v7, %v30_v8 }
  0x1e   :  { %v54_v10 = vclamps-f32 %v35_v9, 10.0 }
  0x20   :  { %38 = vst [vmem:[#allocation5] sm:$0x3] %v54_v10 }
  0x21   :  { %90 = shalt.err (!%p87_p12)
}
  0x22   :  { %s91_s1 = scalar_lea.hbm %s151_s2, 32 }
  0x23   :  { %p92_p13 = scmp.ne.s32.totalorder %s151_s2, %s91_s1  ;;  %p95_p0 = scmp.lt.u32.totalorder %s91_s1, %s151_s2 }
  0x25   :  { %p97_p1 = pnand %p95_p0, %p92_p13 }
  0x27   :  { %100 = shalt.err (!%p97_p1)
}
  0x28   :  { %48 = dma.vmem_to_hbm [thread:$0]  %s46_s24, 32, %s151_s2, [#allocation4]  }
  0x29   :  { %103 = dma.done.wait [#allocation4], 32  }
  0x2a   :  { %104 = vsyncadd [#allocation4], 4294967264 }
  0x2b   :  { %52 = vsyncpa [#allocation3], 1 }
  0x2c   :  { %53 = vsyncpa [#allocation4], 1 }

</bundles_post_ra>
